<compile_context>
chip_gen: v7x
topology: tpu7x:2x2x1
jax: 0.10.0
libtpu: 0.0.40
codegen_flags: <defaults>
</compile_context>

<pallas_src>
import jax
import jax.numpy as jnp
from jax.experimental import pallas as pl
from jax.experimental.pallas import tpu as pltpu

_LANE = 128  # padded output width for a lane-dense store


def critic_a2c_kernel(x_ref, w1_ref, b1_ref, w2_ref, b2_ref, w3_ref, b3_ref,
                      o_ref):
    # Hoist bias reads/broadcasts (read once per grid step, kept in f32).
    b1 = b1_ref[...]
    b2 = b2_ref[...]
    b3 = b3_ref[...]

    # fc1 + ReLU: bf16 MXU matmul, f32 accumulation / elementwise.
    x = x_ref[...].astype(jnp.bfloat16)
    h1 = jnp.dot(x, w1_ref[...], preferred_element_type=jnp.float32)
    h1 = jnp.maximum(h1 + b1, 0.0)

    # fc2 + ReLU
    h2 = jnp.dot(h1.astype(jnp.bfloat16), w2_ref[...],
                 preferred_element_type=jnp.float32)
    h2 = jnp.maximum(h2 + b2, 0.0)

    # fc3 (value head, no activation). w3/b3 are zero-padded to 128 lanes so
    # this store is lane-dense (unmasked vst); only column 0 is meaningful.
    y = jnp.dot(h2.astype(jnp.bfloat16), w3_ref[...],
                preferred_element_type=jnp.float32)
    o_ref[...] = (y + b3).astype(o_ref.dtype)


def _pick_tm(batch, block_m):
    """Batch tile: multiple of 8 (sublane), capped at block_m.
    NOTE: on v7x budget block_m against 64 MiB VMEM (vs 128 MiB on v5e/v6e)."""
    tm = min(block_m, batch)
    tm = ((tm + 7) // 8) * 8
    return max(tm, 8)


def critic_a2c_forward(state, w1, b1, w2, b2, w3, b3, *, block_m=256):
    """state: [B, S]; w1: [S, 64]; b1: [1, 64]; w2: [64, 64]; b2: [1, 64];
    w3: [64, 1]; b3: [1, 1]  ->  value: [B, 1] (float32)."""
    B, S = state.shape
    H1 = w1.shape[1]
    H2 = w2.shape[1]
    A = w3.shape[1]

    # Cast weights to bf16 in the wrapper (halves HBM->VMEM weight bytes).
    w1 = w1.astype(jnp.bfloat16)
    w2 = w2.astype(jnp.bfloat16)
    w3 = w3.astype(jnp.bfloat16)
    b1 = b1.astype(jnp.float32)
    b2 = b2.astype(jnp.float32)
    b3 = b3.astype(jnp.float32)

    # Lane-dense output head: zero-pad fc3 from A(=1) to 128 output lanes.
    w3p = jnp.zeros((H2, _LANE), jnp.bfloat16).at[:, :A].set(w3)
    b3p = jnp.zeros((1, _LANE), jnp.float32).at[:, :A].set(b3)

    # Batch tiling (pad B up to a multiple of the tile).
    tm = _pick_tm(B, block_m)
    Bp = pl.cdiv(B, tm) * tm
    if Bp != B:
        state = jnp.pad(state, ((0, Bp - B), (0, 0)))
    grid = (Bp // tm,)

    resident = lambda i: (0, 0)  # weights/biases: same block every step

    out_padded = pl.pallas_call(
        critic_a2c_kernel,
        out_shape=jax.ShapeDtypeStruct((Bp, _LANE), jnp.float32),
        grid_spec=pltpu.PrefetchScalarGridSpec(
            num_scalar_prefetch=0,
            grid=grid,
            in_specs=[
                pl.BlockSpec((tm, S), lambda i: (i, 0)),       # x tile
                pl.BlockSpec((S, H1), resident),               # w1 (resident)
                pl.BlockSpec((1, H1), resident),               # b1
                pl.BlockSpec((H1, H2), resident),              # w2
                pl.BlockSpec((1, H2), resident),               # b2
                pl.BlockSpec((H2, _LANE), resident),           # w3 (padded)
                pl.BlockSpec((1, _LANE), resident),            # b3 (padded)
            ],
            out_specs=pl.BlockSpec((tm, _LANE), lambda i: (i, 0)),
        ),
        compiler_params=pltpu.CompilerParams(
            dimension_semantics=("parallel",)),  # shards batch across v7x TCs
    )(state, w1, b1, w2, b2, w3p, b3p)

    # Strip batch padding and the lane padding of the value head.
    return out_padded[:B, :A]


def init_params(key, state_size, h=64):
    """Deterministic init mirroring the PyTorch module's reset_parameters().
    weight_reset: uniform(+/- 1/sqrt(out_features)); biases keep the default
    nn.Linear init uniform(+/- 1/sqrt(in_features))."""
    ks = jax.random.split(key, 6)
    lim_w = 1.0 / jnp.sqrt(jnp.float32(h))          # fan_in = weight.size(0) = out
    w1 = jax.random.uniform(ks[0], (state_size, h), jnp.float32, -lim_w, lim_w)
    b1 = jax.random.uniform(ks[1], (1, h), jnp.float32,
                            -1.0 / jnp.sqrt(jnp.float32(state_size)),
                            1.0 / jnp.sqrt(jnp.float32(state_size)))
    w2 = jax.random.uniform(ks[2], (h, h), jnp.float32, -lim_w, lim_w)
    b2 = jax.random.uniform(ks[3], (1, h), jnp.float32,
                            -1.0 / jnp.sqrt(jnp.float32(h)),
                            1.0 / jnp.sqrt(jnp.float32(h)))
    lim_w3 = 1.0 / jnp.sqrt(jnp.float32(1))         # out_features = 1
    w3 = jax.random.uniform(ks[4], (h, 1), jnp.float32, -lim_w3, lim_w3)
    b3 = jax.random.uniform(ks[5], (1, 1), jnp.float32,
                            -1.0 / jnp.sqrt(jnp.float32(h)),
                            1.0 / jnp.sqrt(jnp.float32(h)))
    return w1, b1, w2, b2, w3, b3


def _ref_forward_bf16(state, w1, b1, w2, b2, w3, b3):
    """Plain-JAX reference with the same bf16-inputs / f32-accumulate scheme."""
    bf = jnp.bfloat16
    h1 = jnp.maximum(jnp.dot(state.astype(bf), w1.astype(bf),
                             preferred_element_type=jnp.float32) + b1, 0.0)
    h2 = jnp.maximum(jnp.dot(h1.astype(bf), w2.astype(bf),
                             preferred_element_type=jnp.float32) + b2, 0.0)
    return jnp.dot(h2.astype(bf), w3.astype(bf),
                   preferred_element_type=jnp.float32) + b3


if __name__ == "__main__":
    key = jax.random.PRNGKey(0)
    state_size, hidden, batch = 32, 64, 16

    k_state, k_params = jax.random.split(key)
    state = jax.random.normal(k_state, (batch, state_size), jnp.float32)
    w1, b1, w2, b2, w3, b3 = init_params(k_params, state_size, hidden)

    out = critic_a2c_forward(state, w1, b1, w2, b2, w3, b3)
    out = jax.block_until_ready(out)

    # Cross-check against plain-JAX references.
    ref_bf16 = _ref_forward_bf16(state, w1, b1, w2, b2, w3, b3)
    ref_f32 = jnp.maximum(state @ w1 + b1, 0.0)
    ref_f32 = jnp.maximum(ref_f32 @ w2 + b2, 0.0) @ w3 + b3

    assert out.shape == (batch, 1)
    assert jnp.allclose(out, ref_bf16, atol=1e-3, rtol=1e-3)
    assert jnp.allclose(out, ref_f32, atol=3e-2, rtol=3e-2)

    print("KERNEL_OK")
</pallas_src>

<mosaic_0001>
module attributes {stable_mosaic.version = 11 : i64} {
  func.func @critic_a2c_kernel(%arg0: i32, %arg1: memref<16x32xf32, #tpu.memory_space<vmem>>, %arg2: memref<32x64xbf16, #tpu.memory_space<vmem>>, %arg3: memref<1x64xf32, #tpu.memory_space<vmem>>, %arg4: memref<64x64xbf16, #tpu.memory_space<vmem>>, %arg5: memref<1x64xf32, #tpu.memory_space<vmem>>, %arg6: memref<64x128xbf16, #tpu.memory_space<vmem>>, %arg7: memref<1x128xf32, #tpu.memory_space<vmem>>, %arg8: memref<16x128xf32, #tpu.memory_space<vmem>>) attributes {dimension_semantics = [#tpu.dimension_semantics<parallel>], iteration_bounds = array<i64: 1>, scalar_prefetch = 0 : i64, scratch_operands = 0 : i64, tpu.core_type = #tpu.core_type<tc>, window_params = [{transform_indices = @transform_0, window_bounds = array<i64: 16, 32>}, {pipeline_mode = #tpu.pipeline_mode<synchronous>, transform_indices = @transform_1, window_bounds = array<i64: 32, 64>}, {pipeline_mode = #tpu.pipeline_mode<synchronous>, transform_indices = @transform_2, window_bounds = array<i64: 1, 64>}, {pipeline_mode = #tpu.pipeline_mode<synchronous>, transform_indices = @transform_3, window_bounds = array<i64: 64, 64>}, {pipeline_mode = #tpu.pipeline_mode<synchronous>, transform_indices = @transform_4, window_bounds = array<i64: 1, 64>}, {pipeline_mode = #tpu.pipeline_mode<synchronous>, transform_indices = @transform_5, window_bounds = array<i64: 64, 128>}, {pipeline_mode = #tpu.pipeline_mode<synchronous>, transform_indices = @transform_6, window_bounds = array<i64: 1, 128>}, {transform_indices = @transform_7, window_bounds = array<i64: 16, 128>}]} {
    %c0 = arith.constant 0 : index
    %c0_0 = arith.constant 0 : index
    %0 = vector.load %arg3[%c0, %c0_0] : memref<1x64xf32, #tpu.memory_space<vmem>>, vector<1x64xf32>
    %c0_1 = arith.constant 0 : index
    %c0_2 = arith.constant 0 : index
    %1 = vector.load %arg5[%c0_1, %c0_2] : memref<1x64xf32, #tpu.memory_space<vmem>>, vector<1x64xf32>
    %c0_3 = arith.constant 0 : index
    %c0_4 = arith.constant 0 : index
    %2 = vector.load %arg7[%c0_3, %c0_4] : memref<1x128xf32, #tpu.memory_space<vmem>>, vector<1x128xf32>
    %c0_5 = arith.constant 0 : index
    %c0_6 = arith.constant 0 : index
    %3 = vector.load %arg1[%c0_5, %c0_6] : memref<16x32xf32, #tpu.memory_space<vmem>>, vector<16x32xf32>
    %4 = arith.truncf %3 : vector<16x32xf32> to vector<16x32xbf16>
    %c0_7 = arith.constant 0 : index
    %c0_8 = arith.constant 0 : index
    %5 = vector.load %arg2[%c0_7, %c0_8] : memref<32x64xbf16, #tpu.memory_space<vmem>>, vector<32x64xbf16>
    %cst = arith.constant dense<0.000000e+00> : vector<16x64xf32>
    %6 = tpu.matmul %4, %5, %cst {dimension_numbers = #tpu.dot_dimension_numbers<[1], [0], [0], [1], [0, 0, 1, 1], [], []>} : vector<16x32xbf16>, vector<32x64xbf16>, vector<16x64xf32> -> vector<16x64xf32>
    %7 = vector.broadcast %0 : vector<1x64xf32> to vector<16x64xf32>
    %8 = arith.addf %6, %7 : vector<16x64xf32>
    %cst_9 = arith.constant 0.000000e+00 : f32
    %9 = vector.broadcast %cst_9 : f32 to vector<16x64xf32>
    %10 = arith.maximumf %8, %9 : vector<16x64xf32>
    %11 = arith.truncf %10 : vector<16x64xf32> to vector<16x64xbf16>
    %c0_10 = arith.constant 0 : index
    %c0_11 = arith.constant 0 : index
    %12 = vector.load %arg4[%c0_10, %c0_11] : memref<64x64xbf16, #tpu.memory_space<vmem>>, vector<64x64xbf16>
    %cst_12 = arith.constant dense<0.000000e+00> : vector<16x64xf32>
    %13 = tpu.matmul %11, %12, %cst_12 {dimension_numbers = #tpu.dot_dimension_numbers<[1], [0], [0], [1], [0, 0, 1, 1], [], []>} : vector<16x64xbf16>, vector<64x64xbf16>, vector<16x64xf32> -> vector<16x64xf32>
    %14 = vector.broadcast %1 : vector<1x64xf32> to vector<16x64xf32>
    %15 = arith.addf %13, %14 : vector<16x64xf32>
    %cst_13 = arith.constant 0.000000e+00 : f32
    %16 = vector.broadcast %cst_13 : f32 to vector<16x64xf32>
    %17 = arith.maximumf %15, %16 : vector<16x64xf32>
    %18 = arith.truncf %17 : vector<16x64xf32> to vector<16x64xbf16>
    %c0_14 = arith.constant 0 : index
    %c0_15 = arith.constant 0 : index
    %19 = vector.load %arg6[%c0_14, %c0_15] : memref<64x128xbf16, #tpu.memory_space<vmem>>, vector<64x128xbf16>
    %cst_16 = arith.constant dense<0.000000e+00> : vector<16x128xf32>
    %20 = tpu.matmul %18, %19, %cst_16 {dimension_numbers = #tpu.dot_dimension_numbers<[1], [0], [0], [1], [0, 0, 1, 1], [], []>} : vector<16x64xbf16>, vector<64x128xbf16>, vector<16x128xf32> -> vector<16x128xf32>
    %21 = vector.broadcast %2 : vector<1x128xf32> to vector<16x128xf32>
    %22 = arith.addf %20, %21 : vector<16x128xf32>
    %c0_17 = arith.constant 0 : index
    %c0_18 = arith.constant 0 : index
    %23 = vector.load %arg8[%c0_17, %c0_18] : memref<16x128xf32, #tpu.memory_space<vmem>>, vector<16x128xf32>
    tpu.vector_store %arg8[%c0_17, %c0_18], %22 {strides = array<i32>} : memref<16x128xf32, #tpu.memory_space<vmem>>, vector<16x128xf32>,
    return
  }
  func.func @transform_0(%arg0: i32) -> (i32, i32) {
    %c0_i32 = arith.constant 0 : i32
    %c0_i32_0 = arith.constant 0 : i32
    return %arg0, %c0_i32 : i32, i32
  }
  func.func @transform_1(%arg0: i32) -> (i32, i32) {
    %c0_i32 = arith.constant 0 : i32
    %c0_i32_0 = arith.constant 0 : i32
    %c0_i32_1 = arith.constant 0 : i32
    return %c0_i32, %c0_i32_0 : i32, i32
  }
  func.func @transform_2(%arg0: i32) -> (i32, i32) {
    %c0_i32 = arith.constant 0 : i32
    %c0_i32_0 = arith.constant 0 : i32
    %c0_i32_1 = arith.constant 0 : i32
    return %c0_i32, %c0_i32_0 : i32, i32
  }
  func.func @transform_3(%arg0: i32) -> (i32, i32) {
    %c0_i32 = arith.constant 0 : i32
    %c0_i32_0 = arith.constant 0 : i32
    %c0_i32_1 = arith.constant 0 : i32
    return %c0_i32, %c0_i32_0 : i32, i32
  }
  func.func @transform_4(%arg0: i32) -> (i32, i32) {
    %c0_i32 = arith.constant 0 : i32
    %c0_i32_0 = arith.constant 0 : i32
    %c0_i32_1 = arith.constant 0 : i32
    return %c0_i32, %c0_i32_0 : i32, i32
  }
  func.func @transform_5(%arg0: i32) -> (i32, i32) {
    %c0_i32 = arith.constant 0 : i32
    %c0_i32_0 = arith.constant 0 : i32
    %c0_i32_1 = arith.constant 0 : i32
    return %c0_i32, %c0_i32_0 : i32, i32
  }
  func.func @transform_6(%arg0: i32) -> (i32, i32) {
    %c0_i32 = arith.constant 0 : i32
    %c0_i32_0 = arith.constant 0 : i32
    %c0_i32_1 = arith.constant 0 : i32
    return %c0_i32, %c0_i32_0 : i32, i32
  }
  func.func @transform_7(%arg0: i32) -> (i32, i32) {
    %c0_i32 = arith.constant 0 : i32
    %c0_i32_0 = arith.constant 0 : i32
    return %arg0, %c0_i32 : i32, i32
  }
}

</mosaic_0001>

<bundles_post_ra>
// kernel: tpu_custom_call.1
= control target key start
LH: loop header
LB: loop body
LE: loop exit
PB: predicated region body
PF: predicated region fallthrough
CT: control target
= control target key end

     0   :  { %12 = vsyncpa [#allocation3], 0  ;;  %s695_s0 = inlined_call_operand.hbm [shape: f32[16,32], index: 0, kind: input, shape index: {}]   ;;  %s696_s1 = inlined_call_operand.hbm [shape: bf16[32,64], index: 1, kind: input, shape index: {}]   ;;  %s697_s2 = inlined_call_operand.vmem [shape: f32[1,64], index: 2, kind: input, shape index: {}]   ;;  %s698_s3 = inlined_call_operand.hbm [shape: bf16[64,64], index: 3, kind: input, shape index: {}]   ;;  %s699_s4 = inlined_call_operand.vmem [shape: f32[1,64], index: 4, kind: input, shape index: {}]   ;;  %s700_s5 = inlined_call_operand.hbm [shape: bf16[64,128], index: 5, kind: input, shape index: {}]   ;;  %s701_s6 = inlined_call_operand.vmem [shape: f32[1,128], index: 6, kind: input, shape index: {}]   ;;  %s702_s7 = inlined_call_operand.hbm [shape: f32[16,128], index: 7, kind: output, shape index: {}]  }
   0x1   :  { %13 = vsyncpa [#allocation6], 0 }
   0x2   :  { %14 = vsyncpa [#allocation9], 0 }
   0x3   :  { %15 = vsyncpa [#allocation4], 0  ;;  %s548_s24 = smov [#allocation5]   ;;  %s430_s28 = scalar_lea.hbm %s696_s1, 256 }
   0x4   :  { %s33_s25 = sshll.u32 %s548_s24, 4  ;;  %p431_p0 = scmp.ne.s32.totalorder %s696_s1, %s430_s28  ;;  %s34_s25 = int_to_ptr.vmem [resolvable:$true] %s33_s25 }
   0x5   :  { %p434_p1 = scmp.lt.u32.totalorder %s430_s28, %s696_s1 }
   0x7   :  { %p436_p2 = pnand %p434_p1, %p431_p0 }
   0x9   :  { %439 = shalt.err (!%p436_p2)
}
   0xa   :  { %s440_s10 = scalar_lea.vmem %s34_s25, 256  ;;  %p445_p4 = scmp.lt.s32.totalorder %s34_s25, %s34_s25 }
   0xb   :  { %p441_p3 = scmp.ne.s32.totalorder %s34_s25, %s440_s10  ;;  %p446_p5 = scmp.lt.s32.totalorder %s440_s10, %s440_s10 }
   0xd   :  { %p447_p6 = por %p446_p5, %p445_p4 }
   0xf   :  { %p448_p7 = pnand %p447_p6, %p441_p3 }
  0x11   :  { %451 = shalt.err (!%p448_p7)
}
  0x12   :  { %s549_s11 = smov 64   ;;  %s550_s12 = smov 4  }
  0x13   :  { %39 = dma.hbm_to_vmem [thread:$0]  %s696_s1, 256, %s34_s25, [#allocation6], %s549_s11, %s549_s11, %s550_s12  }
  0x14   :  { %s551_s15 = smov [#allocation2]   ;;  %s452_s19 = scalar_lea.hbm %s695_s0, 256 }
  0x15   :  { %s21_s16 = sshll.u32 %s551_s15, 4  ;;  %p453_p8 = scmp.ne.s32.totalorder %s695_s0, %s452_s19  ;;  %s22_s16 = int_to_ptr.vmem [resolvable:$true] %s21_s16 }
  0x16   :  { %p456_p9 = scmp.lt.u32.totalorder %s452_s19, %s695_s0 }
  0x18   :  { %p458_p10 = pnand %p456_p9, %p453_p8 }
  0x1a   :  { %461 = shalt.err (!%p458_p10)
}
  0x1b   :  { %s462_s24 = scalar_lea.vmem %s22_s16, 256  ;;  %p467_p12 = scmp.lt.s32.totalorder %s22_s16, %s22_s16 }
  0x1c   :  { %p463_p11 = scmp.ne.s32.totalorder %s22_s16, %s462_s24  ;;  %p468_p13 = scmp.lt.s32.totalorder %s462_s24, %s462_s24 }
  0x1e   :  { %p469_p0 = por %p468_p13, %p467_p12 }
  0x20   :  { %p470_p1 = pnand %p469_p0, %p463_p11 }
  0x22   :  { %473 = shalt.err (!%p470_p1)
}
  0x23   :  { %s552_s1 = smov 128   ;;  %s553_s25 = smov 8  }
  0x24   :  { %27 = dma.hbm_to_vmem [thread:$0]  %s695_s0, 256, %s22_s16, [#allocation3], %s552_s1, %s552_s1, %s553_s25  }
  0x25   :  { %s554_s28 = smov [#allocation7]   ;;  %s555_s30 = smov [#allocation8]  }
  0x26   :  { %s47_s29 = sshll.u32 %s554_s28, 4  ;;  %s61_s8 = sshll.u32 %s555_s30, 4  ;;  %s48_s29 = int_to_ptr.vmem [resolvable:$true] %s47_s29  ;;  %s629_s8 = int_to_ptr.vmem [resolvable:$true] %s61_s8 }
  0x27   :  { %s474_s13 = scalar_lea.hbm %s698_s3, 512 }
  0x28   :  { %p475_p2 = scmp.ne.s32.totalorder %s698_s3, %s474_s13  ;;  %p478_p3 = scmp.lt.u32.totalorder %s474_s13, %s698_s3 }
  0x2a   :  { %p480_p4 = pnand %p478_p3, %p475_p2 }
  0x2c   :  { %483 = shalt.err (!%p480_p4)
}
  0x2d   :  { %s484_s0 = scalar_lea.vmem %s48_s29, 512  ;;  %p489_p6 = scmp.lt.s32.totalorder %s48_s29, %s48_s29 }
  0x2e   :  { %p485_p5 = scmp.ne.s32.totalorder %s48_s29, %s484_s0  ;;  %p490_p7 = scmp.lt.s32.totalorder %s484_s0, %s484_s0 }
  0x30   :  { %p491_p8 = por %p490_p7, %p489_p6 }
  0x32   :  { %p492_p9 = pnand %p491_p8, %p485_p5 }
  0x34   :  { %495 = shalt.err (!%p492_p9)
}
  0x35   :  { %53 = dma.hbm_to_vmem [thread:$0]  %s698_s3, 512, %s48_s29, [#allocation6], %s549_s11, %s549_s11, %s550_s12  }
  0x36   :  { %s496_s22 = scalar_lea.hbm %s700_s5, 512 }
  0x37   :  { %p497_p10 = scmp.ne.s32.totalorder %s700_s5, %s496_s22  ;;  %p500_p11 = scmp.lt.u32.totalorder %s496_s22, %s700_s5 }
  0x39   :  { %p502_p12 = pnand %p500_p11, %p497_p10 }
  0x3b   :  { %505 = shalt.err (!%p502_p12)
}
  0x3c   :  { %s506_s28 = scalar_lea.vmem %s629_s8, 512  ;;  %p511_p0 = scmp.lt.s32.totalorder %s629_s8, %s629_s8 }
  0x3d   :  { %p507_p13 = scmp.ne.s32.totalorder %s629_s8, %s506_s28  ;;  %p512_p1 = scmp.lt.s32.totalorder %s506_s28, %s506_s28 }
  0x3f   :  { %p513_p2 = por %p512_p1, %p511_p0 }
  0x41   :  { %p514_p3 = pnand %p513_p2, %p507_p13 }
  0x43   :  { %517 = shalt.err (!%p514_p3)
}
  0x44   :  { %67 = dma.hbm_to_vmem [thread:$0]  %s700_s5, 512, %s629_s8, [#allocation9], %s549_s11, %s549_s11, %s550_s12  }
  0x45   :  { %540 = dma.done.wait [#allocation3], 256  }
  0x46   :  { %541 = vsyncadd [#allocation3], 4294967040 }
  0x47   :  { %542 = dma.done.wait [#allocation6], 768  }
  0x48   :  { %543 = vsyncadd [#allocation6], 4294966528 }
  0x49   :  { %544 = dma.done.wait [#allocation9], 512  }
  0x4a   :  { %545 = vsyncadd [#allocation9], 4294966784  ;;  %v556_v0 = vmov 0.0   ;;  %vm557_vm0 = vmmov 0   ;;  %v420_v1 = vld [vmem:[#allocation5] sm:$0xff]   ;;  %v421_v2 = vld [vmem:[#allocation5 + $0x8] sm:$0xff]  }
  0x4b   :  { %377 = vmatprep.subr.bf16.mxu0 %v556_v0  ;;  %381 = vmatprep.mubr.msk.bf16.mxu0 %vm557_vm0, %v556_v0  ;;  %v86_v3 = vld [vmem:[#allocation2] sm:$0xff]  ;;  %v87_v4 = vld [vmem:[#allocation2 + $0x8] sm:$0xff]  ;;  %vm111_vm1 = vcmask 261120   ;;  %v424_v8 = vld [vmem:[#allocation7 + $0x10] sm:$0xff]   ;;  %vm197_vm2 = vcmask 523264   ;;  %s558_s9 = smov [#allocation10]  }
  0x4c   :  { %385 = vmatprep.subr.bf16.mxu1 %v556_v0  ;;  %393 = vmatprep.mubr.msk.bf16.mxu1 %vm557_vm0, %v556_v0  ;;  %v422_v5 = vld [vmem:[#allocation7] sm:$0xff]   ;;  %v423_v6 = vld [vmem:[#allocation7 + $0x8] sm:$0xff]   ;;  %v88_v7 = vpack.c.bf16 %v87_v4, %v86_v3  ;;  %v425_v9 = vld [vmem:[#allocation7 + $0x18] sm:$0xff]   ;;  %s334_s10 = sshll.u32 %s558_s9, 4  ;;  %s335_s10 = int_to_ptr.vmem [resolvable:$true] %s334_s10 }
  0x4d   :  { %378 = vmatpush3.bf16.msra.mxu0 %v420_v1  ;;  %386 = vmatpush3.bf16.msra.mxu1 %v422_v5  ;;  %v426_v10 = vld [vmem:[#allocation8] sm:$0xff]   ;;  %v427_v11 = vld [vmem:[#allocation8 + $0x8] sm:$0xff]   ;;  %v428_v22 = vld [vmem:[#allocation8 + $0x10] sm:$0xff]   ;;  %p523_p5 = scmp.lt.s32.totalorder %s335_s10, %s335_s10 }
  0x4e   :  { %379 = vmatprep.subr.bf16.mxu0 %v556_v0  ;;  %387 = vmatprep.subr.bf16.mxu1 %v556_v0  ;;  %v348_v12 = vld [vmem:[%s697_s2] ss:$0 sm:$0xff]  ;;  %v429_v23 = vld [vmem:[#allocation8 + $0x18] sm:$0xff]  }
  0x4f   :  { %v352_v24 = vld [vmem:[%s699_s4] ss:$0 sm:$0xff]  ;;  %s518_s4 = scalar_lea.vmem %s335_s10, 256 }
  0x50   :  { %v358_v34 = vld [vmem:[%s701_s6] ss:$0 sm:$0xff]  ;;  %p519_p4 = scmp.ne.s32.totalorder %s335_s10, %s518_s4  ;;  %p524_p6 = scmp.lt.s32.totalorder %s518_s4, %s518_s4 }
  0x51   :  { %380 = vmatpush3.bf16.msra.mxu0 %v421_v2  ;;  %388 = vmatpush3.bf16.msra.mxu1 %v423_v6 }
  0x52   :  { %397 = vmatprep.subr.bf16.mxu0 %v556_v0  ;;  %389 = vmatprep.subr.bf16.mxu1 %v556_v0  ;;  %p525_p7 = por %p524_p6, %p523_p5 }
  0x54   :  { %382 = vmatmul.mubr.msk.bf16.vlgmr.msra.gmra.mrb[0].mxu0 %vm111_vm1, %v88_v7  ;;  %p526_p8 = pnand %p525_p7, %p519_p4 }
  0x55   :  { %405 = vmatprep.mubr.msk.bf16.mxu0 %vm557_vm0, %v556_v0  ;;  %390 = vmatpush3.bf16.msra.mxu1 %v424_v8 }
  0x56   :  { %391 = vmatprep.subr.bf16.mxu1 %v556_v0  ;;  %398 = vmatpush3.bf16.msra.mxu0 %v426_v10 }
  0x57   :  { %399 = vmatprep.subr.bf16.mxu0 %v556_v0 }
  0x59   :  { %392 = vmatpush3.bf16.msra.mxu1 %v425_v9 }
  0x5a   :  { %400 = vmatpush3.bf16.msra.mxu0 %v427_v11 }
  0x5b   :  { %401 = vmatprep.subr.bf16.mxu0 %v556_v0 }
  0x5e   :  { %402 = vmatpush3.bf16.msra.mxu0 %v428_v22 }
  0x5f   :  { %403 = vmatprep.subr.bf16.mxu0 %v556_v0 }
  0x62   :  { %404 = vmatpush3.bf16.msra.mxu0 %v429_v23 }
 0x127   :  { %v149_v13 = vpop.f32.mrb[0].mxu0 }
 0x128   :  { %v150_v14 = vadd.f32 %v348_v12, %v149_v13  ;;  %v383_v15 = vpop.f32.mrb[1].mxu0 }
 0x129   :  { %v152_v16 = vpop.f32.mrb[2].mxu0 }
 0x12a   :  { %v153_v17 = vadd.f32 %v348_v12, %v152_v16  ;;  %v384_v18 = vpop.f32.mrb[3].mxu0  ;;  %v156_v19 = vmax.f32 %v150_v14, 0.0 }
 0x12c   :  { %v157_v20 = vmax.f32 %v153_v17, 0.0 }
 0x12e   :  { %v158_v21 = vpack.c.bf16 %v157_v20, %v156_v19 }
 0x130   :  { %394 = vmatmul.mubr.msk.bf16.vlgmr.msra.gmra.mrb[0].mxu1 %vm197_vm2, %v158_v21 }
 0x203   :  { %v235_v25 = vpop.f32.mrb[0].mxu1 }
 0x204   :  { %v236_v26 = vadd.f32 %v352_v24, %v235_v25  ;;  %v395_v27 = vpop.f32.mrb[1].mxu1 }
 0x205   :  { %v238_v28 = vpop.f32.mrb[2].mxu1 }
 0x206   :  { %v239_v29 = vadd.f32 %v352_v24, %v238_v28  ;;  %v396_v30 = vpop.f32.mrb[3].mxu1  ;;  %v242_v31 = vmax.f32 %v236_v26, 0.0 }
 0x208   :  { %v243_v32 = vmax.f32 %v239_v29, 0.0 }
 0x20a   :  { %v244_v33 = vpack.c.bf16 %v243_v32, %v242_v31 }
 0x20c   :  { %406 = vmatmul.mubr.msk.bf16.vlgmr.msra.gmra.mrb[4].mxu0 %vm197_vm2, %v244_v33 }
 0x2df   :  { %v320_v35 = vpop.f32.mrb[4].mxu0 }
 0x2e0   :  { %v321_v36 = vadd.f32 %v358_v34, %v320_v35  ;;  %v407_v37 = vpop.f32.mrb[5].mxu0 }
 0x2e1   :  { %v323_v38 = vpop.f32.mrb[6].mxu0 }
 0x2e2   :  { %327 = vst [vmem:[#allocation10] sm:$0xff] %v321_v36  ;;  %v324_v39 = vadd.f32 %v358_v34, %v323_v38  ;;  %v408_v40 = vpop.f32.mrb[7].mxu0 }
 0x2e4   :  { %328 = vst [vmem:[#allocation10 + $0x8] sm:$0xff] %v324_v39 }
 0x2e5   :  { %529 = shalt.err (!%p526_p8)
}
 0x2e6   :  { %s530_s14 = scalar_lea.hbm %s702_s7, 256 }
 0x2e7   :  { %p531_p9 = scmp.ne.s32.totalorder %s702_s7, %s530_s14  ;;  %p534_p10 = scmp.lt.u32.totalorder %s530_s14, %s702_s7 }
 0x2e9   :  { %p536_p11 = pnand %p534_p10, %p531_p9 }
 0x2eb   :  { %539 = shalt.err (!%p536_p11)
}
 0x2ec   :  { %340 = dma.vmem_to_hbm [thread:$0]  %s335_s10, 256, %s702_s7, [#allocation4], %s552_s1, %s552_s1, %s553_s25  }
 0x2ed   :  { %546 = dma.done.wait [#allocation4], 256  }
 0x2ee   :  { %547 = vsyncadd [#allocation4], 4294967040 }
 0x2ef   :  { %344 = vsyncpa [#allocation3], 1 }
 0x2f0   :  { %345 = vsyncpa [#allocation6], 1 }
 0x2f1   :  { %346 = vsyncpa [#allocation9], 1 }
 0x2f2   :  { %347 = vsyncpa [#allocation4], 1 }

</bundles_post_ra>
